<compile_context>
chip_gen: v6e
topology: v6e:2x2x1
jax: 0.10.0
libtpu: 0.0.40
codegen_flags: <defaults>
</compile_context>

<pallas_src>
import jax
import jax.numpy as jnp
from jax.experimental import pallas as pl
from jax.experimental.pallas import tpu as pltpu


def classifier_kernel(x_ref,        # (TB, O, L)
                      wfused_ref,   # (L, C+M)  = [wp.T | wg1.T]
                      wgc_ref,      # (O, 1)    gate Conv1d(O->1) weight
                      bg1p_ref,     # (1, M)    gate Linear1 bias with Conv1d bias folded in
                      wg2t_ref,     # (M, M)    gate Linear2 weight (transposed)
                      bg2_ref,      # (1, M)
                      bp_ref,       # (1, C)    proba Linear bias
                      wpcT_ref,     # (O, M)    proba Conv1d(O->M) weight (transposed)
                      bpcrep_ref,   # (1, M*C)  proba Conv1d bias, repeated per class (lane-dense)
                      g_ref,        # (TB, M)
                      p_ref):       # (TB, M*C) lane-dense, reshaped to (B, M, C) in wrapper
    TB, O, L = x_ref.shape
    C = bp_ref.shape[1]
    M = bg2_ref.shape[1]

    # One big MXU pass over x serving BOTH branches.
    x2d = x_ref[...].reshape(TB * O, L)
    y = jnp.dot(x2d, wfused_ref[...], preferred_element_type=jnp.float32)   # (TB*O, C+M)

    # ---------------- proba branch ----------------
    # Linear(L->C) + bias + ReLU (per object row), then Conv1d(O->M, k=1) as a
    # VPU broadcast-multiply + sublane reduce over O, assembled lane-dense over M.
    r = jnp.maximum(y[:, :C] + bp_ref[...], 0.0).reshape(TB, O, C)          # (TB, O, C)
    cols = []
    for m in range(M):                                   # static unroll (M is small)
        wm = wpcT_ref[:, m:m + 1]                        # (O, 1) -> broadcasts over (TB, O, C)
        cols.append(jnp.sum(r * wm, axis=1))             # (TB, C)
    z = jnp.concatenate(cols, axis=-1) + bpcrep_ref[...]  # (TB, M*C), lane-dense
    p_ref[...] = jax.nn.sigmoid(z)

    # ---------------- gate branch ----------------
    # Conv1d(O->1, k=1) reordered after Linear1 (exact: both linear, before ReLU);
    # the Conv1d bias is already folded into bg1p.
    yg = y[:, C:C + M].reshape(TB, O, M)                                    # (TB, O, M)
    gpre = jnp.sum(yg * wgc_ref[...], axis=1) + bg1p_ref[...]               # (TB, M)
    h = jnp.maximum(gpre, 0.0)
    h = jnp.dot(h, wg2t_ref[...], preferred_element_type=jnp.float32) + bg2_ref[...]
    mmax = jnp.max(h, axis=-1, keepdims=True)
    e = jnp.exp(h - mmax)
    denom = jnp.sum(e, axis=-1, keepdims=True)
    g_ref[...] = e * pl.reciprocal(denom, approx=False)  # EUP reciprocal instead of VALU divide


def classifier_forward(x, params, *, tb=128):
    """x: (B, num_obj, input_dim) float32. Returns (g_x: (B, M), p_yi_x: (B, M, C))."""
    B, O, L = x.shape
    M = params["wg2"].shape[0]
    C = params["wp"].shape[0]

    # ---- weight prep (layout + exact linear folds, done once outside the kernel) ----
    wg1t = params["wg1"].T                               # (L, M)
    wpt = params["wp"].T                                 # (L, C)
    wfused = jnp.concatenate([wpt, wg1t], axis=1)        # (L, C+M): one K=L MXU pass
    wgc = params["wgc"].reshape(O, 1)                    # Conv1d(O->1,k=1) weight
    bgc = params["bgc"].reshape(())
    # Fold gate Conv1d bias into gate Linear1 bias: bg1' = bg1 + bgc * sum_L wg1.T
    bg1p = (params["bg1"] + bgc * jnp.sum(wg1t, axis=0)).reshape(1, M)
    wg2t = params["wg2"].T                               # (M, M)
    bg2 = params["bg2"].reshape(1, M)
    bp = params["bp"].reshape(1, C)
    wpcT = params["wpc"].reshape(M, O).T                 # (O, M)
    bpcrep = jnp.repeat(params["bpc"], C).reshape(1, M * C)

    # ---- batch tiling: TB elements per grid step (whole batch if small) ----
    TB = B if B <= tb else tb
    Bp = pl.cdiv(B, TB) * TB
    if Bp != B:
        x = jnp.pad(x, ((0, Bp - B), (0, 0), (0, 0)))
    grid = (Bp // TB,)

    full2 = lambda b: (0, 0)
    g, p_flat = pl.pallas_call(
        classifier_kernel,
        out_shape=(
            jax.ShapeDtypeStruct((Bp, M), jnp.float32),
            jax.ShapeDtypeStruct((Bp, M * C), jnp.float32),
        ),
        grid=grid,
        in_specs=[
            pl.BlockSpec((TB, O, L), lambda b: (b, 0, 0)),
            pl.BlockSpec((L, C + M), full2),
            pl.BlockSpec((O, 1), full2),
            pl.BlockSpec((1, M), full2),
            pl.BlockSpec((M, M), full2),
            pl.BlockSpec((1, M), full2),
            pl.BlockSpec((1, C), full2),
            pl.BlockSpec((O, M), full2),
            pl.BlockSpec((1, M * C), full2),
        ],
        out_specs=(
            pl.BlockSpec((TB, M), lambda b: (b, 0)),
            pl.BlockSpec((TB, M * C), lambda b: (b, 0)),
        ),
        compiler_params=pltpu.CompilerParams(dimension_semantics=("parallel",)),
    )(x, wfused, wgc, bg1p, wg2t, bg2, bp, wpcT, bpcrep)

    g = g[:B]
    p = p_flat[:B].reshape(B, M, C)
    return g, p


def ref_forward(x, params):
    """Pure-JAX reference mirroring the PyTorch forward (eval mode)."""
    wgc = params["wgc"].reshape(-1)              # (O,)
    h = jnp.einsum("bol,o->bl", x, wgc) + params["bgc"][0]
    h = jnp.maximum(h @ params["wg1"].T + params["bg1"], 0.0)
    h = h @ params["wg2"].T + params["bg2"]
    g = jax.nn.softmax(h, axis=-1)
    z = jnp.maximum(jnp.einsum("bol,cl->boc", x, params["wp"]) + params["bp"], 0.0)
    z = jnp.einsum("boc,mo->bmc", z, params["wpc"].reshape(params["wpc"].shape[0], -1))
    z = z + params["bpc"][None, :, None]
    return g, jax.nn.sigmoid(z)


def init_params(key, num_classes, num_of_mixture, input_dim, num_obj):
    ks = jax.random.split(key, 10)
    s = 0.05
    return {
        # gate: Conv1d(num_obj, 1, 1), Linear(input_dim, M), Linear(M, M)
        "wgc": jax.random.normal(ks[0], (1, num_obj, 1), jnp.float32) * s,
        "bgc": jax.random.normal(ks[1], (1,), jnp.float32) * s,
        "wg1": jax.random.normal(ks[2], (num_of_mixture, input_dim), jnp.float32) * s,
        "bg1": jax.random.normal(ks[3], (num_of_mixture,), jnp.float32) * s,
        "wg2": jax.random.normal(ks[4], (num_of_mixture, num_of_mixture), jnp.float32) * s,
        "bg2": jax.random.normal(ks[5], (num_of_mixture,), jnp.float32) * s,
        # proba: Linear(input_dim, num_classes), Conv1d(num_obj, M, 1)
        "wp": jax.random.normal(ks[6], (num_classes, input_dim), jnp.float32) * s,
        "bp": jax.random.normal(ks[7], (num_classes,), jnp.float32) * s,
        "wpc": jax.random.normal(ks[8], (num_of_mixture, num_obj, 1), jnp.float32) * s,
        "bpc": jax.random.normal(ks[9], (num_of_mixture,), jnp.float32) * s,
    }


if __name__ == "__main__":
    # Small shapes consistent with the module's forward (x: (B, num_obj, input_dim)).
    B, num_obj, input_dim = 2, 16, 128
    num_classes, num_of_mixture = 32, 8

    key = jax.random.PRNGKey(0)
    kx, kp = jax.random.split(key)
    x = jax.random.normal(kx, (B, num_obj, input_dim), jnp.float32)
    params = init_params(kp, num_classes, num_of_mixture, input_dim, num_obj)

    g_x, p_yi_x = classifier_forward(x, params)
    jax.block_until_ready((g_x, p_yi_x))

    g_ref, p_ref = ref_forward(x, params)
    assert g_x.shape == (B, num_of_mixture)
    assert p_yi_x.shape == (B, num_of_mixture, num_classes)
    assert jnp.allclose(g_x, g_ref, atol=1e-5), "gate branch mismatch"
    assert jnp.allclose(p_yi_x, p_ref, atol=1e-5), "proba branch mismatch"

    print("KERNEL_OK")
</pallas_src>

<mosaic_0001>
module attributes {stable_mosaic.version = 11 : i64} {
  func.func @classifier_kernel(%arg0: i32, %arg1: memref<2x16x128xf32, #tpu.memory_space<vmem>>, %arg2: memref<128x40xf32, #tpu.memory_space<vmem>>, %arg3: memref<16x1xf32, #tpu.memory_space<vmem>>, %arg4: memref<1x8xf32, #tpu.memory_space<vmem>>, %arg5: memref<8x8xf32, #tpu.memory_space<vmem>>, %arg6: memref<1x8xf32, #tpu.memory_space<vmem>>, %arg7: memref<1x32xf32, #tpu.memory_space<vmem>>, %arg8: memref<16x8xf32, #tpu.memory_space<vmem>>, %arg9: memref<1x256xf32, #tpu.memory_space<vmem>>, %arg10: memref<2x8xf32, #tpu.memory_space<vmem>>, %arg11: memref<2x256xf32, #tpu.memory_space<vmem>>) attributes {dimension_semantics = [#tpu.dimension_semantics<parallel>], iteration_bounds = array<i64: 1>, scalar_prefetch = 0 : i64, scratch_operands = 0 : i64, tpu.core_type = #tpu.core_type<tc>, window_params = [{transform_indices = @transform_0, window_bounds = array<i64: 2, 16, 128>}, {pipeline_mode = #tpu.pipeline_mode<synchronous>, transform_indices = @transform_1, window_bounds = array<i64: 128, 40>}, {pipeline_mode = #tpu.pipeline_mode<synchronous>, transform_indices = @transform_2, window_bounds = array<i64: 16, 1>}, {pipeline_mode = #tpu.pipeline_mode<synchronous>, transform_indices = @transform_3, window_bounds = array<i64: 1, 8>}, {pipeline_mode = #tpu.pipeline_mode<synchronous>, transform_indices = @transform_4, window_bounds = array<i64: 8, 8>}, {pipeline_mode = #tpu.pipeline_mode<synchronous>, transform_indices = @transform_5, window_bounds = array<i64: 1, 8>}, {pipeline_mode = #tpu.pipeline_mode<synchronous>, transform_indices = @transform_6, window_bounds = array<i64: 1, 32>}, {pipeline_mode = #tpu.pipeline_mode<synchronous>, transform_indices = @transform_7, window_bounds = array<i64: 16, 8>}, {pipeline_mode = #tpu.pipeline_mode<synchronous>, transform_indices = @transform_8, window_bounds = array<i64: 1, 256>}, {transform_indices = @transform_9, window_bounds = array<i64: 2, 8>}, {transform_indices = @transform_10, window_bounds = array<i64: 2, 256>}]} {
    %c0 = arith.constant 0 : index
    %c0_0 = arith.constant 0 : index
    %c0_1 = arith.constant 0 : index
    %0 = vector.load %arg1[%c0, %c0_0, %c0_1] : memref<2x16x128xf32, #tpu.memory_space<vmem>>, vector<2x16x128xf32>
    %1 = vector.shape_cast %0 : vector<2x16x128xf32> to vector<32x128xf32>
    %c0_2 = arith.constant 0 : index
    %c0_3 = arith.constant 0 : index
    %2 = vector.load %arg2[%c0_2, %c0_3] : memref<128x40xf32, #tpu.memory_space<vmem>>, vector<128x40xf32>
    %cst = arith.constant dense<0.000000e+00> : vector<32x40xf32>
    %3 = tpu.matmul %1, %2, %cst {dimension_numbers = #tpu.dot_dimension_numbers<[1], [0], [0], [1], [0, 0, 1, 1], [], []>} : vector<32x128xf32>, vector<128x40xf32>, vector<32x40xf32> -> vector<32x40xf32>
    %4 = vector.extract_strided_slice %3 {offsets = [0, 0], sizes = [32, 32], strides = [1, 1]} : vector<32x40xf32> to vector<32x32xf32>
    %c0_4 = arith.constant 0 : index
    %c0_5 = arith.constant 0 : index
    %5 = vector.load %arg7[%c0_4, %c0_5] : memref<1x32xf32, #tpu.memory_space<vmem>>, vector<1x32xf32>
    %6 = vector.broadcast %5 : vector<1x32xf32> to vector<32x32xf32>
    %7 = arith.addf %4, %6 : vector<32x32xf32>
    %cst_6 = arith.constant 0.000000e+00 : f32
    %8 = vector.broadcast %cst_6 : f32 to vector<32x32xf32>
    %9 = arith.maximumf %7, %8 : vector<32x32xf32>
    %10 = vector.shape_cast %9 : vector<32x32xf32> to vector<2x16x32xf32>
    %c0_7 = arith.constant 0 : index
    %c0_8 = arith.constant 0 : index
    %11 = vector.load %arg8[%c0_7, %c0_8] : memref<16x8xf32, #tpu.memory_space<vmem>>, vector<16x1xf32>
    %12 = vector.shape_cast %11 : vector<16x1xf32> to vector<1x16x1xf32>
    %13 = vector.broadcast %12 : vector<1x16x1xf32> to vector<2x16x32xf32>
    %14 = arith.mulf %10, %13 : vector<2x16x32xf32>
    %cst_9 = arith.constant dense<0.000000e+00> : vector<2x32xf32>
    %15 = vector.multi_reduction <add>, %14, %cst_9 [1] : vector<2x16x32xf32> to vector<2x32xf32>
    %c0_10 = arith.constant 0 : index
    %c1 = arith.constant 1 : index
    %16 = vector.load %arg8[%c0_10, %c1] : memref<16x8xf32, #tpu.memory_space<vmem>>, vector<16x1xf32>
    %17 = vector.shape_cast %16 : vector<16x1xf32> to vector<1x16x1xf32>
    %18 = vector.broadcast %17 : vector<1x16x1xf32> to vector<2x16x32xf32>
    %19 = arith.mulf %10, %18 : vector<2x16x32xf32>
    %cst_11 = arith.constant dense<0.000000e+00> : vector<2x32xf32>
    %20 = vector.multi_reduction <add>, %19, %cst_11 [1] : vector<2x16x32xf32> to vector<2x32xf32>
    %c0_12 = arith.constant 0 : index
    %c2 = arith.constant 2 : index
    %21 = vector.load %arg8[%c0_12, %c2] : memref<16x8xf32, #tpu.memory_space<vmem>>, vector<16x1xf32>
    %22 = vector.shape_cast %21 : vector<16x1xf32> to vector<1x16x1xf32>
    %23 = vector.broadcast %22 : vector<1x16x1xf32> to vector<2x16x32xf32>
    %24 = arith.mulf %10, %23 : vector<2x16x32xf32>
    %cst_13 = arith.constant dense<0.000000e+00> : vector<2x32xf32>
    %25 = vector.multi_reduction <add>, %24, %cst_13 [1] : vector<2x16x32xf32> to vector<2x32xf32>
    %c0_14 = arith.constant 0 : index
    %c3 = arith.constant 3 : index
    %26 = vector.load %arg8[%c0_14, %c3] : memref<16x8xf32, #tpu.memory_space<vmem>>, vector<16x1xf32>
    %27 = vector.shape_cast %26 : vector<16x1xf32> to vector<1x16x1xf32>
    %28 = vector.broadcast %27 : vector<1x16x1xf32> to vector<2x16x32xf32>
    %29 = arith.mulf %10, %28 : vector<2x16x32xf32>
    %cst_15 = arith.constant dense<0.000000e+00> : vector<2x32xf32>
    %30 = vector.multi_reduction <add>, %29, %cst_15 [1] : vector<2x16x32xf32> to vector<2x32xf32>
    %c0_16 = arith.constant 0 : index
    %c4 = arith.constant 4 : index
    %31 = vector.load %arg8[%c0_16, %c4] : memref<16x8xf32, #tpu.memory_space<vmem>>, vector<16x1xf32>
    %32 = vector.shape_cast %31 : vector<16x1xf32> to vector<1x16x1xf32>
    %33 = vector.broadcast %32 : vector<1x16x1xf32> to vector<2x16x32xf32>
    %34 = arith.mulf %10, %33 : vector<2x16x32xf32>
    %cst_17 = arith.constant dense<0.000000e+00> : vector<2x32xf32>
    %35 = vector.multi_reduction <add>, %34, %cst_17 [1] : vector<2x16x32xf32> to vector<2x32xf32>
    %c0_18 = arith.constant 0 : index
    %c5 = arith.constant 5 : index
    %36 = vector.load %arg8[%c0_18, %c5] : memref<16x8xf32, #tpu.memory_space<vmem>>, vector<16x1xf32>
    %37 = vector.shape_cast %36 : vector<16x1xf32> to vector<1x16x1xf32>
    %38 = vector.broadcast %37 : vector<1x16x1xf32> to vector<2x16x32xf32>
    %39 = arith.mulf %10, %38 : vector<2x16x32xf32>
    %cst_19 = arith.constant dense<0.000000e+00> : vector<2x32xf32>
    %40 = vector.multi_reduction <add>, %39, %cst_19 [1] : vector<2x16x32xf32> to vector<2x32xf32>
    %c0_20 = arith.constant 0 : index
    %c6 = arith.constant 6 : index
    %41 = vector.load %arg8[%c0_20, %c6] : memref<16x8xf32, #tpu.memory_space<vmem>>, vector<16x1xf32>
    %42 = vector.shape_cast %41 : vector<16x1xf32> to vector<1x16x1xf32>
    %43 = vector.broadcast %42 : vector<1x16x1xf32> to vector<2x16x32xf32>
    %44 = arith.mulf %10, %43 : vector<2x16x32xf32>
    %cst_21 = arith.constant dense<0.000000e+00> : vector<2x32xf32>
    %45 = vector.multi_reduction <add>, %44, %cst_21 [1] : vector<2x16x32xf32> to vector<2x32xf32>
    %c0_22 = arith.constant 0 : index
    %c7 = arith.constant 7 : index
    %46 = vector.load %arg8[%c0_22, %c7] : memref<16x8xf32, #tpu.memory_space<vmem>>, vector<16x1xf32>
    %47 = vector.shape_cast %46 : vector<16x1xf32> to vector<1x16x1xf32>
    %48 = vector.broadcast %47 : vector<1x16x1xf32> to vector<2x16x32xf32>
    %49 = arith.mulf %10, %48 : vector<2x16x32xf32>
    %cst_23 = arith.constant dense<0.000000e+00> : vector<2x32xf32>
    %50 = vector.multi_reduction <add>, %49, %cst_23 [1] : vector<2x16x32xf32> to vector<2x32xf32>
    %51 = tpu.concatenate %15, %20, %25, %30, %35, %40, %45, %50 in 1 : vector<2x32xf32>, vector<2x32xf32>, vector<2x32xf32>, vector<2x32xf32>, vector<2x32xf32>, vector<2x32xf32>, vector<2x32xf32>, vector<2x32xf32> -> vector<2x256xf32>
    %c0_24 = arith.constant 0 : index
    %c0_25 = arith.constant 0 : index
    %52 = vector.load %arg9[%c0_24, %c0_25] : memref<1x256xf32, #tpu.memory_space<vmem>>, vector<1x256xf32>
    %53 = vector.broadcast %52 : vector<1x256xf32> to vector<2x256xf32>
    %54 = arith.addf %51, %53 : vector<2x256xf32>
    %55 = arith.negf %54 : vector<2x256xf32>
    %56 = math.exp %55 : vector<2x256xf32>
    %cst_26 = arith.constant 1.000000e+00 : f32
    %57 = vector.broadcast %cst_26 : f32 to vector<2x256xf32>
    %58 = arith.addf %57, %56 : vector<2x256xf32>
    %59 = arith.divf %57, %58 : vector<2x256xf32>
    %c0_27 = arith.constant 0 : index
    %c0_28 = arith.constant 0 : index
    %60 = vector.load %arg11[%c0_27, %c0_28] : memref<2x256xf32, #tpu.memory_space<vmem>>, vector<2x256xf32>
    tpu.vector_store %arg11[%c0_27, %c0_28], %59 {strides = array<i32>} : memref<2x256xf32, #tpu.memory_space<vmem>>, vector<2x256xf32>,
    %61 = vector.extract_strided_slice %3 {offsets = [0, 32], sizes = [32, 8], strides = [1, 1]} : vector<32x40xf32> to vector<32x8xf32>
    %62 = vector.shape_cast %61 : vector<32x8xf32> to vector<2x16x8xf32>
    %c0_29 = arith.constant 0 : index
    %c0_30 = arith.constant 0 : index
    %63 = vector.load %arg3[%c0_29, %c0_30] : memref<16x1xf32, #tpu.memory_space<vmem>>, vector<16x1xf32>
    %64 = vector.shape_cast %63 : vector<16x1xf32> to vector<1x16x1xf32>
    %65 = vector.broadcast %64 : vector<1x16x1xf32> to vector<2x16x8xf32>
    %66 = arith.mulf %62, %65 : vector<2x16x8xf32>
    %cst_31 = arith.constant dense<0.000000e+00> : vector<2x8xf32>
    %67 = vector.multi_reduction <add>, %66, %cst_31 [1] : vector<2x16x8xf32> to vector<2x8xf32>
    %c0_32 = arith.constant 0 : index
    %c0_33 = arith.constant 0 : index
    %68 = vector.load %arg4[%c0_32, %c0_33] : memref<1x8xf32, #tpu.memory_space<vmem>>, vector<1x8xf32>
    %69 = vector.broadcast %68 : vector<1x8xf32> to vector<2x8xf32>
    %70 = arith.addf %67, %69 : vector<2x8xf32>
    %cst_34 = arith.constant 0.000000e+00 : f32
    %71 = vector.broadcast %cst_34 : f32 to vector<2x8xf32>
    %72 = arith.maximumf %70, %71 : vector<2x8xf32>
    %c0_35 = arith.constant 0 : index
    %c0_36 = arith.constant 0 : index
    %73 = vector.load %arg5[%c0_35, %c0_36] : memref<8x8xf32, #tpu.memory_space<vmem>>, vector<8x8xf32>
    %cst_37 = arith.constant dense<0.000000e+00> : vector<2x8xf32>
    %74 = tpu.matmul %72, %73, %cst_37 {dimension_numbers = #tpu.dot_dimension_numbers<[1], [0], [0], [1], [0, 0, 1, 1], [], []>} : vector<2x8xf32>, vector<8x8xf32>, vector<2x8xf32> -> vector<2x8xf32>
    %c0_38 = arith.constant 0 : index
    %c0_39 = arith.constant 0 : index
    %75 = vector.load %arg6[%c0_38, %c0_39] : memref<1x8xf32, #tpu.memory_space<vmem>>, vector<1x8xf32>
    %76 = vector.broadcast %75 : vector<1x8xf32> to vector<2x8xf32>
    %77 = arith.addf %74, %76 : vector<2x8xf32>
    %cst_40 = arith.constant dense<0xFF800000> : vector<2xf32>
    %78 = vector.multi_reduction <maximumf>, %77, %cst_40 [1] : vector<2x8xf32> to vector<2xf32>
    %79 = vector.shape_cast %78 : vector<2xf32> to vector<2x1xf32>
    %80 = vector.broadcast %79 : vector<2x1xf32> to vector<2x8xf32>
    %81 = arith.subf %77, %80 : vector<2x8xf32>
    %82 = math.exp %81 : vector<2x8xf32>
    %cst_41 = arith.constant dense<0.000000e+00> : vector<2xf32>
    %83 = vector.multi_reduction <add>, %82, %cst_41 [1] : vector<2x8xf32> to vector<2xf32>
    %84 = vector.shape_cast %83 : vector<2xf32> to vector<2x1xf32>
    %85 = tpu.reciprocal %84 : vector<2x1xf32> -> vector<2x1xf32>
    %86 = vector.broadcast %85 : vector<2x1xf32> to vector<2x8xf32>
    %87 = arith.mulf %82, %86 : vector<2x8xf32>
    %c0_42 = arith.constant 0 : index
    %c0_43 = arith.constant 0 : index
    %88 = vector.load %arg10[%c0_42, %c0_43] : memref<2x8xf32, #tpu.memory_space<vmem>>, vector<2x8xf32>
    tpu.vector_store %arg10[%c0_42, %c0_43], %87 {strides = array<i32>} : memref<2x8xf32, #tpu.memory_space<vmem>>, vector<2x8xf32>,
    return
  }
  func.func @transform_0(%arg0: i32) -> (i32, i32, i32) {
    %c0_i32 = arith.constant 0 : i32
    %c0_i32_0 = arith.constant 0 : i32
    %c0_i32_1 = arith.constant 0 : i32
    return %arg0, %c0_i32, %c0_i32_0 : i32, i32, i32
  }
  func.func @transform_1(%arg0: i32) -> (i32, i32) {
    %c0_i32 = arith.constant 0 : i32
    %c0_i32_0 = arith.constant 0 : i32
    %c0_i32_1 = arith.constant 0 : i32
    return %c0_i32, %c0_i32_0 : i32, i32
  }
  func.func @transform_2(%arg0: i32) -> (i32, i32) {
    %c0_i32 = arith.constant 0 : i32
    %c0_i32_0 = arith.constant 0 : i32
    %c0_i32_1 = arith.constant 0 : i32
    return %c0_i32, %c0_i32_0 : i32, i32
  }
  func.func @transform_3(%arg0: i32) -> (i32, i32) {
    %c0_i32 = arith.constant 0 : i32
    %c0_i32_0 = arith.constant 0 : i32
    %c0_i32_1 = arith.constant 0 : i32
    return %c0_i32, %c0_i32_0 : i32, i32
  }
  func.func @transform_4(%arg0: i32) -> (i32, i32) {
    %c0_i32 = arith.constant 0 : i32
    %c0_i32_0 = arith.constant 0 : i32
    %c0_i32_1 = arith.constant 0 : i32
    return %c0_i32, %c0_i32_0 : i32, i32
  }
  func.func @transform_5(%arg0: i32) -> (i32, i32) {
    %c0_i32 = arith.constant 0 : i32
    %c0_i32_0 = arith.constant 0 : i32
    %c0_i32_1 = arith.constant 0 : i32
    return %c0_i32, %c0_i32_0 : i32, i32
  }
  func.func @transform_6(%arg0: i32) -> (i32, i32) {
    %c0_i32 = arith.constant 0 : i32
    %c0_i32_0 = arith.constant 0 : i32
    %c0_i32_1 = arith.constant 0 : i32
    return %c0_i32, %c0_i32_0 : i32, i32
  }
  func.func @transform_7(%arg0: i32) -> (i32, i32) {
    %c0_i32 = arith.constant 0 : i32
    %c0_i32_0 = arith.constant 0 : i32
    %c0_i32_1 = arith.constant 0 : i32
    return %c0_i32, %c0_i32_0 : i32, i32
  }
  func.func @transform_8(%arg0: i32) -> (i32, i32) {
    %c0_i32 = arith.constant 0 : i32
    %c0_i32_0 = arith.constant 0 : i32
    %c0_i32_1 = arith.constant 0 : i32
    return %c0_i32, %c0_i32_0 : i32, i32
  }
  func.func @transform_9(%arg0: i32) -> (i32, i32) {
    %c0_i32 = arith.constant 0 : i32
    %c0_i32_0 = arith.constant 0 : i32
    return %arg0, %c0_i32 : i32, i32
  }
  func.func @transform_10(%arg0: i32) -> (i32, i32) {
    %c0_i32 = arith.constant 0 : i32
    %c0_i32_0 = arith.constant 0 : i32
    return %arg0, %c0_i32 : i32, i32
  }
}

</mosaic_0001>

<bundles_post_ra>
// kernel: tpu_custom_call.1
= control target key start
LH: loop header
LB: loop body
LE: loop exit
PB: predicated region body
PF: predicated region fallthrough
CT: control target
= control target key end

     0   :  { %16 = vsyncpa [#allocation3], 0  ;;  %v825_v2 = vmov 0   ;;  %v826_v4 = vmov 1   ;;  %s1121_s0 = inlined_call_operand.vmem [shape: f32[2,16,128], index: 0, kind: input, shape index: {}]   ;;  %s1122_s1 = inlined_call_operand.vmem [shape: f32[128,40], index: 1, kind: input, shape index: {}]   ;;  %s1123_s2 = inlined_call_operand.vmem [shape: f32[16,1], index: 2, kind: input, shape index: {}]   ;;  %s1124_s3 = inlined_call_operand.vmem [shape: f32[1,8], index: 3, kind: input, shape index: {}]   ;;  %s1125_s4 = inlined_call_operand.vmem [shape: f32[8,8], index: 4, kind: input, shape index: {}]   ;;  %s1126_s5 = inlined_call_operand.vmem [shape: f32[1,8], index: 5, kind: input, shape index: {}]   ;;  %s1127_s6 = inlined_call_operand.vmem [shape: f32[1,32], index: 6, kind: input, shape index: {}]   ;;  %s1128_s7 = inlined_call_operand.vmem [shape: f32[16,8], index: 7, kind: input, shape index: {}]   ;;  %s1129_s8 = inlined_call_operand.vmem [shape: f32[1,256], index: 8, kind: input, shape index: {}]   ;;  %s1130_s9 = inlined_call_operand.hbm [shape: f32[2,8], index: 9, kind: output, shape index: {0}]   ;;  %s1131_s10 = inlined_call_operand.hbm [shape: f32[2,256], index: 10, kind: output, shape index: {1}]  }
   0x1   :  { %v55_v0 = vld [vmem:[%s1122_s1 + $0x78] sm:$0xff]  ;;  %v54_v1 = vld [vmem:[%s1122_s1 + $0x70] sm:$0xff]  ;;  %755 = vset.pattern.permute.xlu0 %v825_v2  ;;  %v53_v3 = vld [vmem:[%s1122_s1 + $0x68] sm:$0xff]  ;;  %757 = vset.pattern.permute.xlu1 %v826_v4 }
   0x2   :  { %697 = vmatprep.subr.mxu0 %v55_v0  ;;  %v52_v5 = vld [vmem:[%s1122_s1 + $0x60] sm:$0xff]  ;;  %v51_v7 = vld [vmem:[%s1122_s1 + $0x58] sm:$0xff]  ;;  %v50_v9 = vld [vmem:[%s1122_s1 + $0x50] sm:$0xff] }
   0x3   :  { %698 = vmatpush3.msra.mxu0 %v55_v0  ;;  %v36_v6 = vld [vmem:[%s1121_s0] sm:$0xff]  ;;  %v493_v10 = vld [vmem:[%s1123_s2 + $0x8] sm:$0xff] }
   0x4   :  { %699 = vmatprep.subr.mxu0 %v54_v1  ;;  %729 = vmatprep.mubr.f32.mxu0 %v36_v6  ;;  %v492_v8 = vld [vmem:[%s1123_s2] sm:$0xff] }
   0x5   :  { %700 = vmatpush3.msra.mxu0 %v54_v1  ;;  %496 = vperm.xlu0 %755, %v492_v8   ;;  %v672_v11 = vld [vmem:[%s1124_s3] ss:$0 sm:$0xff] }
   0x6   :  { %701 = vmatprep.subr.mxu0 %v53_v3 }
   0x7   :  { %702 = vmatpush3.msra.mxu0 %v53_v3 }
   0x8   :  { %703 = vmatprep.subr.mxu0 %v52_v5 }
   0x9   :  { %704 = vmatpush3.msra.mxu0 %v52_v5 }
   0xa   :  { %17 = vsyncpa [#allocation5], 0  ;;  %705 = vmatprep.subr.mxu0 %v51_v7  ;;  %s827_s13 = smov 32   ;;  %v49_v12 = vld [vmem:[%s1122_s1 + $0x48] sm:$0xff]  ;;  %501 = vperm.xlu0 %755, %v493_v10   ;;  %v48_v13 = vld [vmem:[%s1122_s1 + $0x40] sm:$0xff]  ;;  %v828_v20 = vmov 5  }
   0xb   :  { %533 = vrot.lane.b32.xlu1 %v672_v11, %s827_s13  ;;  %706 = vmatpush3.msra.mxu0 %v51_v7  ;;  %v936_v14 = vld [vmem:[%s1128_s7] sm:$0xff]  ;;  %v47_v15 = vld [vmem:[%s1122_s1 + $0x38] sm:$0xff]  ;;  %v46_v16 = vld [vmem:[%s1122_s1 + $0x30] sm:$0xff]  ;;  %v829_v23 = vmov 6   ;;  %v830_v27 = vmov 3   ;;  %v831_v31 = vmov 0.0  }
   0xc   :  { %707 = vmatprep.subr.mxu0 %v50_v9  ;;  %v45_v17 = vld [vmem:[%s1122_s1 + $0x28] sm:$0xff]  ;;  %v44_v19 = vld [vmem:[%s1122_s1 + $0x20] sm:$0xff]  ;;  %v43_v21 = vld [vmem:[%s1122_s1 + $0x18] sm:$0xff]  ;;  %735 = vmatprep.subr.mxu1 %v831_v31  ;;  %vm832_vm0 = vmmov 0   ;;  %vm508_vm1 = vcmask 326912   ;;  %vm403_vm2 = vcmask 1041409  }
   0xd   :  { %708 = vmatpush3.msra.mxu0 %v50_v9  ;;  %v951_v18 = vld [vmem:[%s1128_s7 + $0x8] sm:$0xff]  ;;  %v42_v22 = vld [vmem:[%s1122_s1 + $0x10] sm:$0xff]  ;;  %v40_v25 = vld [vmem:[%s1122_s1] sm:$0xff]  ;;  %737 = vmatprep.mubr.msk.f32.mxu1 %vm832_vm0, %v831_v31  ;;  %v835_v5 = vmov 7   ;;  %v836_v6 = vmov 4   ;;  %vm554_vm3 = vcmask 64512  }
   0xe   :  { %709 = vmatprep.subr.mxu0 %v49_v12  ;;  %756 = vset.pattern.permute.xlu0 %v826_v4  ;;  %v41_v24 = vld [vmem:[%s1122_s1 + $0x8] sm:$0xff]  ;;  %v38_v28 = vld [vmem:[%s1121_s0 + $0x10] sm:$0xff]  ;;  %v39_v29 = vld [vmem:[%s1121_s0 + $0x18] sm:$0xff]  ;;  %v834_v4 = vmov 2   ;;  %vm172_vm4 = vcmask 261120   ;;  %vm627_vm5 = vcmask 58368  }
   0xf   :  { %710 = vmatpush3.msra.mxu0 %v49_v12  ;;  %192 = vperm.xlu0 %756, %v936_v14   ;;  %v37_v26 = vld [vmem:[%s1121_s0 + $0x8] sm:$0xff]  ;;  %v540_v30 = vld [vmem:[%s1125_s4] sm:$0xff]  ;;  %s833_s0 = smov 96   ;;  %vm449_vm6 = vcmask 785408   ;;  %vm447_vm7 = vcmask 523264  }
  0x10   :  { %711 = vmatprep.subr.mxu0 %v48_v13  ;;  %736 = vmatpush3.msra.mxu1 %v540_v30  ;;  %v668_v8 = vld [vmem:[%s1127_s6] ss:$0 sm:$0xff]  ;;  %s837_s6 = smov 64  }
  0x11   :  { %712 = vmatpush3.msra.mxu0 %v48_v13 }
  0x12   :  { %713 = vmatprep.subr.mxu0 %v47_v15 }
  0x13   :  { %714 = vmatpush3.msra.mxu0 %v47_v15  ;;  %759 = vset.pattern.permute.xlu0 %v828_v20 }
  0x14   :  { %715 = vmatprep.subr.mxu0 %v46_v16  ;;  %316 = vperm.xlu0 %759, %v951_v18  }
  0x15   :  { %716 = vmatpush3.msra.mxu0 %v46_v16 }
  0x16   :  { %717 = vmatprep.subr.mxu0 %v45_v17 }
  0x17   :  { %718 = vmatpush3.msra.mxu0 %v45_v17 }
  0x18   :  { %719 = vmatprep.subr.mxu0 %v44_v19  ;;  %761 = vset.pattern.permute.xlu0 %v829_v23 }
  0x19   :  { %720 = vmatpush3.msra.mxu0 %v44_v19  ;;  %342 = vperm.xlu0 %761, %v936_v14  }
  0x1a   :  { %721 = vmatprep.subr.mxu0 %v43_v21 }
  0x1b   :  { %722 = vmatpush3.msra.mxu0 %v43_v21 }
  0x1c   :  { %723 = vmatprep.subr.mxu0 %v42_v22 }
  0x1d   :  { %724 = vmatpush3.msra.mxu0 %v42_v22  ;;  %764 = vset.pattern.permute.xlu0 %v830_v27 }
  0x1e   :  { %725 = vmatprep.subr.mxu0 %v41_v24  ;;  %256 = vperm.xlu0 %764, %v951_v18  }
  0x1f   :  { %726 = vmatpush3.msra.mxu0 %v41_v24 }
  0x20   :  { %727 = vmatprep.subr.mxu0 %v40_v25 }
  0x21   :  { %728 = vmatpush3.msra.mxu0 %v40_v25 }
  0x22   :  { %730 = vmatmul.mubr.f32.vlgmr.msra.gmra.mxu0 %v37_v26  ;;  %768 = vset.pattern.permute.xlu0 %v825_v2 }
  0x23   :  { %732 = vmatprep.mubr.f32.mxu0 %v38_v28 }
  0x26   :  { %733 = vmatmul.mubr.f32.gmra.mxu0 %v39_v29 }
  0x7d   :  { %v534_v59 = vpop.permute.xlu1 %533 }
  0x80   :  { %v497_v32 = vpop.permute.xlu0 %496 }
  0x85   :  { %v502_v33 = vpop.permute.xlu0 %501 }
  0x8a   :  { %v193_v12 = vpop.permute.xlu0 %192 }
  0xe2   :  { %v987_v34 = vpop.f32.mrf.mxu0 }
  0xe3   :  { %v505_v35 = vmul.f32 %v987_v34, %v502_v33 }
  0xe4   :  { %v122_v36 = vpop.f32.mrf.mxu0 }
  0xe5   :  { %v504_v37 = vmul.f32 %v497_v32, %v122_v36  ;;  %v510_v39 = vsel %vm508_vm1, %v505_v35, 0.0  ;;  %v148_v9 = vadd.f32 %v668_v8, %v122_v36 }
  0xe6   :  { %v734_v38 = vpop.f32.mrf.mxu0 }
  0xe7   :  { %v509_v40 = vsel %vm508_vm1, %v504_v37, 0.0  ;;  %v507_v42 = vmul.f32 %v734_v38, %v502_v33  ;;  %v151_v11 = vadd.f32 %v734_v38, %v668_v8  ;;  %v1012_v13 = vmax.f32 %v148_v9, 0.0 }
  0xe8   :  { %v511_v41 = vadd.f32 %v510_v39, %v509_v40  ;;  %v132_v43 = vpop.f32.mrf.mxu0 }
  0xe9   :  { %v506_v44 = vmul.f32 %v497_v32, %v132_v43  ;;  %v519_v46 = vsel %vm508_vm1, %v507_v42, 0.0  ;;  %v150_v10 = vadd.f32 %v668_v8, %v132_v43  ;;  %v1018_v16 = vmax.f32 %v151_v11, 0.0 }
  0xea   :  { %v512_v45 = vrot.slane %v511_v41, 4  ;;  %v199_v17 = vmul.f32 %v193_v12, %v1012_v13 }
  0xeb   :  { %v518_v47 = vsel %vm508_vm1, %v506_v44, 0.0  ;;  %v1014_v15 = vmax.f32 %v150_v10, 0.0 }
  0xec   :  { %v513_v48 = vadd.f32 %v512_v45, %v511_v41  ;;  %v520_v49 = vadd.f32 %v519_v46, %v518_v47  ;;  %v203_v25 = vsel %vm172_vm4, %v199_v17, 0.0 }
  0xee   :  { %v521_v50 = vrot.slane %v520_v49, 4  ;;  %v514_v51 = vrot.slane %v513_v48, 2 }
  0xf0   :  { %v522_v52 = vadd.f32 %v521_v50, %v520_v49  ;;  %v515_v53 = vadd.f32 %v514_v51, %v513_v48 }
  0xf2   :  { %v523_v54 = vrot.slane %v522_v52, 2  ;;  %v516_v55 = vrot.slane %v515_v53, 1 }
  0xf4   :  { %v524_v56 = vadd.f32 %v523_v54, %v522_v52  ;;  %v517_v57 = vadd.f32 %v516_v55, %v515_v53 }
  0xf6   :  { %v525_v58 = vrot.slane %v524_v56, 1  ;;  %v536_v61 = vadd.f32 %v534_v59, %v517_v57 }
  0xf8   :  { %v526_v60 = vadd.f32 %v525_v58, %v524_v56  ;;  %v538_v0 = vmax.f32 %v536_v61, 0.0 }
  0xfa   :  { %v537_v62 = vadd.f32 %v534_v59, %v526_v60 }
  0xfc   :  { %v539_v63 = vmax.f32 %v537_v62, 0.0 }
  0xfe   :  { %v550_v1 = vrot.slane %v539_v63, 7 }
 0x100   :  { %v551_v3 = vsel %vm403_vm2, %v550_v1, %v538_v0 }
 0x101   :  { %552 = vrot.lane.b32.xlu1 %v551_v3, %s833_s0 }
 0x105   :  { %196 = vperm.xlu1 %757, %v951_v18  }
 0x109   :  { %758 = vset.pattern.permute.xlu1 %v828_v20  ;;  %v317_v20 = vpop.permute.xlu0 %316 }
 0x10a   :  { %312 = vperm.xlu1 %758, %v936_v14   ;;  %v322_v24 = vmul.f32 %v317_v20, %v1018_v16 }
 0x10c   :  { %v333_v37 = vsel %vm172_vm4, %v322_v24, 0.0 }
 0x10d   :  { %v343_v53 = vpop.permute.xlu0 %342 }
 0x10e   :  { %760 = vset.pattern.permute.xlu1 %v834_v4  ;;  %v349_v57 = vmul.f32 %v343_v53, %v1012_v13  ;;  %v351_v58 = vmul.f32 %v343_v53, %v1014_v15 }
 0x10f   :  { %222 = vperm.xlu1 %760, %v936_v14  }
 0x110   :  { %v362_v24 = vsel %vm172_vm4, %v351_v58, 0.0 }
 0x113   :  { %226 = vperm.xlu1 %760, %v951_v18  }
 0x117   :  { %762 = vset.pattern.permute.xlu1 %v829_v23 }
 0x118   :  { %346 = vperm.xlu1 %762, %v951_v18  }
 0x11c   :  { %763 = vset.pattern.permute.xlu1 %v830_v27 }
 0x11d   :  { %252 = vperm.xlu1 %763, %v936_v14  }
 0x121   :  { %765 = vset.pattern.permute.xlu1 %v835_v5 }
 0x122   :  { %372 = vperm.xlu1 %765, %v936_v14  }
 0x126   :  { %376 = vperm.xlu1 %765, %v951_v18  }
 0x12a   :  { %766 = vset.pattern.permute.xlu1 %v825_v2  ;;  %v149_v2 = vadd.f32 %v987_v34, %v668_v8 }
 0x12b   :  { %160 = vperm.xlu1 %766, %v936_v14  }
 0x12f   :  { %165 = vperm.xlu1 %766, %v951_v18  }
 0x133   :  { %767 = vset.pattern.permute.xlu1 %v836_v6 }
 0x134   :  { %282 = vperm.xlu1 %767, %v936_v14   ;;  %v1016_v14 = vmax.f32 %v149_v2, 0.0 }
 0x136   :  { %v320_v23 = vmul.f32 %v317_v20, %v1016_v14 }
 0x138   :  { %286 = vperm.xlu1 %767, %v951_v18   ;;  %v201_v18 = vmul.f32 %v193_v12, %v1014_v15  ;;  %v324_v36 = vsel %vm172_vm4, %v320_v23, 0.0  ;;  %v353_v23 = vsel %vm172_vm4, %v349_v57, 0.0 }
 0x13a   :  { %v212_v27 = vsel %vm172_vm4, %v201_v18, 0.0 }
 0x173   :  { %v553_v7 = vpop.permute.xlu1 %552 }
 0x174   :  { %738 = vmatmul.mubr.msk.f32.vlgmr.msra.gmra.mxu1 %vm554_vm3, %v553_v7 }
 0x180   :  { %v197_v19 = vpop.permute.xlu1 %196 }
 0x181   :  { %v200_v21 = vmul.f32 %v197_v19, %v1016_v14  ;;  %v202_v22 = vmul.f32 %v197_v19, %v1018_v16 }
 0x183   :  { %v204_v26 = vsel %vm172_vm4, %v200_v21, 0.0  ;;  %v213_v28 = vsel %vm172_vm4, %v202_v22, 0.0 }
 0x184   :  { %v205_v29 = vadd.f32 %v204_v26, %v203_v25  ;;  %v214_v30 = vadd.f32 %v213_v28, %v212_v27 }
 0x185   :  { %v313_v31 = vpop.permute.xlu1 %312 }
 0x186   :  { %v206_v32 = vrot.slane %v205_v29, 4  ;;  %v215_v33 = vrot.slane %v214_v30, 4  ;;  %v319_v34 = vmul.f32 %v313_v31, %v1012_v13  ;;  %v321_v35 = vmul.f32 %v313_v31, %v1014_v15 }
 0x188   :  { %v207_v38 = vadd.f32 %v206_v32, %v205_v29  ;;  %v216_v39 = vadd.f32 %v215_v33, %v214_v30  ;;  %v323_v40 = vsel %vm172_vm4, %v319_v34, 0.0  ;;  %v332_v41 = vsel %vm172_vm4, %v321_v35, 0.0 }
 0x189   :  { %v325_v42 = vadd.f32 %v324_v36, %v323_v40  ;;  %v334_v43 = vadd.f32 %v333_v37, %v332_v41 }
 0x18a   :  { %v208_v44 = vrot.slane %v207_v38, 2  ;;  %v217_v45 = vrot.slane %v216_v39, 2  ;;  %v223_v46 = vpop.permute.xlu1 %222 }
 0x18b   :  { %v326_v47 = vrot.slane %v325_v42, 4  ;;  %v335_v48 = vrot.slane %v334_v43, 4  ;;  %v229_v49 = vmul.f32 %v223_v46, %v1012_v13  ;;  %v231_v50 = vmul.f32 %v223_v46, %v1014_v15 }
 0x18c   :  { %v209_v51 = vadd.f32 %v208_v44, %v207_v38  ;;  %v218_v52 = vadd.f32 %v217_v45, %v216_v39 }
 0x18d   :  { %v327_v54 = vadd.f32 %v326_v47, %v325_v42  ;;  %v336_v55 = vadd.f32 %v335_v48, %v334_v43  ;;  %v233_v1 = vsel %vm172_vm4, %v229_v49, 0.0  ;;  %v242_v3 = vsel %vm172_vm4, %v231_v50, 0.0 }
 0x18e   :  { %v227_v56 = vpop.permute.xlu1 %226  ;;  %v210_v59 = vrot.slane %v209_v51, 1  ;;  %v219_v60 = vrot.slane %v218_v52, 1 }
 0x18f   :  { %v328_v61 = vrot.slane %v327_v54, 2  ;;  %v337_v62 = vrot.slane %v336_v55, 2  ;;  %v230_v63 = vmul.f32 %v227_v56, %v1016_v14  ;;  %v232_v0 = vmul.f32 %v227_v56, %v1018_v16 }
 0x190   :  { %v211_v4 = vadd.f32 %v210_v59, %v209_v51  ;;  %v220_v5 = vadd.f32 %v219_v60, %v218_v52 }
 0x191   :  { %v234_v6 = vsel %vm172_vm4, %v230_v63, 0.0  ;;  %v243_v7 = vsel %vm172_vm4, %v232_v0, 0.0  ;;  %v329_v8 = vadd.f32 %v328_v61, %v327_v54  ;;  %v338_v9 = vadd.f32 %v337_v62, %v336_v55 }
 0x192   :  { %v235_v10 = vadd.f32 %v234_v6, %v233_v1  ;;  %v244_v2 = vadd.f32 %v243_v7, %v242_v3  ;;  %v408_v11 = vsel %vm403_vm2, %v220_v5, %v211_v4 }
 0x193   :  { %v347_v12 = vpop.permute.xlu1 %346  ;;  %409 = vrot.lane.b32.xlu1 %v408_v11, %s827_s13  ;;  %v330_v17 = vrot.slane %v329_v8, 1  ;;  %v339_v18 = vrot.slane %v338_v9, 1 }
 0x194   :  { %v236_v19 = vrot.slane %v235_v10, 4  ;;  %v245_v20 = vrot.slane %v244_v2, 4  ;;  %v350_v21 = vmul.f32 %v347_v12, %v1016_v14  ;;  %v352_v22 = vmul.f32 %v347_v12, %v1018_v16 }
 0x195   :  { %v331_v25 = vadd.f32 %v330_v17, %v329_v8  ;;  %v340_v26 = vadd.f32 %v339_v18, %v338_v9 }
 0x196   :  { %v237_v27 = vadd.f32 %v236_v19, %v235_v10  ;;  %v246_v28 = vadd.f32 %v245_v20, %v244_v2  ;;  %v354_v29 = vsel %vm172_vm4, %v350_v21, 0.0  ;;  %v363_v30 = vsel %vm172_vm4, %v352_v22, 0.0  ;;  %v257_v22 = vpop.permute.xlu0 %256 }
 0x197   :  { %v355_v31 = vadd.f32 %v354_v29, %v353_v23  ;;  %v364_v32 = vadd.f32 %v363_v30, %v362_v24  ;;  %v430_v33 = vsel %vm403_vm2, %v340_v26, %v331_v25  ;;  %v260_v25 = vmul.f32 %v257_v22, %v1016_v14 }
 0x198   :  { %v238_v34 = vrot.slane %v237_v27, 2  ;;  %v247_v35 = vrot.slane %v246_v28, 2  ;;  %v253_v36 = vpop.permute.xlu1 %252  ;;  %431 = vrot.lane.b32.xlu1 %v430_v33, %s827_s13  ;;  %v262_v26 = vmul.f32 %v257_v22, %v1018_v16  ;;  %v673_v33 = vld [vmem:[%s1126_s5] ss:$0 sm:$0xff] }
 0x199   :  { %v356_v37 = vrot.slane %v355_v31, 4  ;;  %v365_v38 = vrot.slane %v364_v32, 4  ;;  %v259_v23 = vmul.f32 %v253_v36, %v1012_v13  ;;  %v261_v24 = vmul.f32 %v253_v36, %v1014_v15 }
 0x19a   :  { %v239_v39 = vadd.f32 %v238_v34, %v237_v27  ;;  %v248_v40 = vadd.f32 %v247_v35, %v246_v28  ;;  %v264_v29 = vsel %vm172_vm4, %v260_v25, 0.0  ;;  %v273_v30 = vsel %vm172_vm4, %v262_v26, 0.0 }
 0x19b   :  { %v357_v41 = vadd.f32 %v356_v37, %v355_v31  ;;  %v366_v42 = vadd.f32 %v365_v38, %v364_v32  ;;  %v263_v27 = vsel %vm172_vm4, %v259_v23, 0.0  ;;  %v272_v28 = vsel %vm172_vm4, %v261_v24, 0.0 }
 0x19c   :  { %v240_v43 = vrot.slane %v239_v39, 1  ;;  %v249_v44 = vrot.slane %v248_v40, 1  ;;  %v265_v31 = vadd.f32 %v264_v29, %v263_v27  ;;  %v274_v32 = vadd.f32 %v273_v30, %v272_v28 }
 0x19d   :  { %v358_v45 = vrot.slane %v357_v41, 2  ;;  %v367_v46 = vrot.slane %v366_v42, 2  ;;  %v373_v47 = vpop.permute.xlu1 %372  ;;  %v456_v24 = vlaneseq }
 0x19e   :  { %v241_v48 = vadd.f32 %v240_v43, %v239_v39  ;;  %v250_v49 = vadd.f32 %v249_v44, %v248_v40  ;;  %v379_v52 = vmul.f32 %v373_v47, %v1012_v13  ;;  %v381_v53 = vmul.f32 %v373_v47, %v1014_v15 }
 0x19f   :  { %v359_v50 = vadd.f32 %v358_v45, %v357_v41  ;;  %v368_v51 = vadd.f32 %v367_v46, %v366_v42  ;;  %v266_v35 = vrot.slane %v265_v31, 4  ;;  %v275_v36 = vrot.slane %v274_v32, 4 }
 0x1a0   :  { %v414_v55 = vsel %vm403_vm2, %v250_v49, %v241_v48  ;;  %v383_v62 = vsel %vm172_vm4, %v379_v52, 0.0  ;;  %v392_v63 = vsel %vm172_vm4, %v381_v53, 0.0  ;;  %v457_v29 = vshrl.u32 %v456_v24, 7 }
 0x1a1   :  { %v377_v54 = vpop.permute.xlu1 %376  ;;  %v360_v56 = vrot.slane %v359_v50, 1  ;;  %v369_v57 = vrot.slane %v368_v51, 1  ;;  %415 = vrot.lane.b32.xlu1 %v414_v55, %s837_s6  ;;  %v267_v40 = vadd.f32 %v266_v35, %v265_v31  ;;  %v276_v41 = vadd.f32 %v275_v36, %v274_v32  ;;  %v454_v36 = vld [vmem:[%s1129_s8] sm:$0x3]  ;;  %s838_s8 = smov [#allocation4]  }
 0x1a2   :  { %v380_v58 = vmul.f32 %v377_v54, %v1016_v14  ;;  %v382_v59 = vmul.f32 %v377_v54, %v1018_v16  ;;  %v462_v35 = vsub.s32 1, %v457_v29  ;;  %s656_s24 = sshll.u32 %s838_s8, 4  ;;  %s657_s24 = int_to_ptr.vmem [resolvable:$true] %s656_s24 }
 0x1a3   :  { %v361_v60 = vadd.f32 %v360_v56, %v359_v50  ;;  %v370_v61 = vadd.f32 %v369_v57, %v368_v51  ;;  %v268_v42 = vrot.slane %v267_v40, 2  ;;  %v277_v43 = vrot.slane %v276_v41, 2  ;;  %s781_s25 = scalar_lea.vmem %s657_s24, 64  ;;  %p786_p1 = scmp.lt.s32.totalorder %s657_s24, %s657_s24 }
 0x1a4   :  { %v384_v0 = vsel %vm172_vm4, %v380_v58, 0.0  ;;  %v393_v1 = vsel %vm172_vm4, %v382_v59, 0.0  ;;  %p782_p0 = scmp.ne.s32.totalorder %s657_s24, %s781_s25  ;;  %p787_p2 = scmp.lt.s32.totalorder %s781_s25, %s781_s25 }
 0x1a5   :  { %v385_v3 = vadd.f32 %v384_v0, %v383_v62  ;;  %v394_v4 = vadd.f32 %v393_v1, %v392_v63  ;;  %v436_v5 = vsel %vm403_vm2, %v370_v61, %v361_v60  ;;  %v269_v44 = vadd.f32 %v268_v42, %v267_v40 }
 0x1a6   :  { %437 = vrot.lane.b32.xlu1 %v436_v5, %s837_s6  ;;  %v278_v45 = vadd.f32 %v277_v43, %v276_v41  ;;  %v161_v51 = vpop.permute.xlu1 %160  ;;  %p788_p3 = por %p787_p2, %p786_p1 }
 0x1a7   :  { %v386_v6 = vrot.slane %v385_v3, 4  ;;  %v395_v7 = vrot.slane %v394_v4, 4  ;;  %v270_v46 = vrot.slane %v269_v44, 1 }
 0x1a8   :  { %v279_v47 = vrot.slane %v278_v45, 1  ;;  %p789_p4 = pnand %p788_p3, %p782_p0 }
 0x1a9   :  { %v387_v8 = vadd.f32 %v386_v6, %v385_v3  ;;  %v396_v9 = vadd.f32 %v395_v7, %v394_v4  ;;  %v271_v48 = vadd.f32 %v270_v46, %v269_v44  ;;  %v168_v6 = vmul.f32 %v161_v51, %v1012_v13 }
 0x1aa   :  { %v280_v49 = vadd.f32 %v279_v47, %v278_v45  ;;  %v166_v52 = vpop.permute.xlu1 %165  ;;  %v170_v7 = vmul.f32 %v161_v51, %v1014_v15  ;;  %v463_v44 = vrot.slane %v454_v36, %v462_v35  ;;  %v458_v51 = vsub.s32 0, %v457_v29 }
 0x1ab   :  { %v388_v10 = vrot.slane %v387_v8, 2  ;;  %v397_v2 = vrot.slane %v396_v9, 2  ;;  %v169_v4 = vmul.f32 %v166_v52, %v1016_v14  ;;  %v171_v5 = vmul.f32 %v166_v52, %v1018_v16 }
 0x1ac   :  { %v420_v50 = vsel %vm403_vm2, %v280_v49, %v271_v48 }
 0x1ad   :  { %v389_v11 = vadd.f32 %v388_v10, %v387_v8  ;;  %v398_v12 = vadd.f32 %v397_v2, %v396_v9  ;;  %v174_v2 = vsel %vm172_vm4, %v169_v4, 0.0 }
 0x1af   :  { %v390_v17 = vrot.slane %v389_v11, 1  ;;  %v399_v18 = vrot.slane %v398_v12, 1  ;;  %v283_v53 = vpop.permute.xlu1 %282 }
 0x1b0   :  { %v289_v57 = vmul.f32 %v283_v53, %v1012_v13  ;;  %v291_v58 = vmul.f32 %v283_v53, %v1014_v15 }
 0x1b1   :  { %v391_v19 = vadd.f32 %v390_v17, %v389_v11  ;;  %v400_v20 = vadd.f32 %v399_v18, %v398_v12  ;;  %v183_v11 = vsel %vm172_vm4, %v171_v5, 0.0  ;;  %v173_v12 = vsel %vm172_vm4, %v168_v6, 0.0 }
 0x1b2   :  { %v293_v61 = vsel %vm172_vm4, %v289_v57, 0.0  ;;  %v302_v62 = vsel %vm172_vm4, %v291_v58, 0.0  ;;  %v182_v17 = vsel %vm172_vm4, %v170_v7, 0.0  ;;  %v175_v18 = vadd.f32 %v174_v2, %v173_v12 }
 0x1b3   :  { %v442_v21 = vsel %vm403_vm2, %v400_v20, %v391_v19  ;;  %v287_v54 = vpop.permute.xlu1 %286  ;;  %v184_v19 = vadd.f32 %v183_v11, %v182_v17 }
 0x1b4   :  { %443 = vrot.lane.b32.xlu1 %v442_v21, %s833_s0  ;;  %v290_v55 = vmul.f32 %v287_v54, %v1016_v14  ;;  %v292_v56 = vmul.f32 %v287_v54, %v1018_v16  ;;  %v176_v21 = vrot.slane %v175_v18, 4 }
 0x1b5   :  { %v185_v13 = vrot.slane %v184_v19, 4 }
 0x1b6   :  { %v294_v59 = vsel %vm172_vm4, %v290_v55, 0.0  ;;  %v303_v60 = vsel %vm172_vm4, %v292_v56, 0.0  ;;  %v177_v25 = vadd.f32 %v176_v21, %v175_v18  ;;  %v459_v56 = vrot.slane %v454_v36, %v458_v51 }
 0x1b7   :  { %v295_v63 = vadd.f32 %v294_v59, %v293_v61  ;;  %v304_v0 = vadd.f32 %v303_v60, %v302_v62  ;;  %v186_v26 = vadd.f32 %v185_v13, %v184_v19 }
 0x1b8   :  { %v178_v30 = vrot.slane %v177_v25, 2 }
 0x1b9   :  { %v296_v1 = vrot.slane %v295_v63, 4  ;;  %v305_v3 = vrot.slane %v304_v0, 4  ;;  %v187_v31 = vrot.slane %v186_v26, 2 }
 0x1bb   :  { %v297_v8 = vadd.f32 %v296_v1, %v295_v63  ;;  %v306_v9 = vadd.f32 %v305_v3, %v304_v0 }
 0x1bd   :  { %v298_v14 = vrot.slane %v297_v8, 2  ;;  %v307_v20 = vrot.slane %v306_v9, 2 }
 0x1bf   :  { %v299_v22 = vadd.f32 %v298_v14, %v297_v8  ;;  %v308_v15 = vadd.f32 %v307_v20, %v306_v9 }
 0x1c1   :  { %v300_v27 = vrot.slane %v299_v22, 1  ;;  %v309_v28 = vrot.slane %v308_v15, 1 }
 0x1c3   :  { %v301_v32 = vadd.f32 %v300_v27, %v299_v22 }
 0x205   :  { %v410_v10 = vpop.permute.xlu1 %409 }
 0x20a   :  { %v432_v16 = vpop.permute.xlu1 %431 }
 0x213   :  { %v416_v23 = vpop.permute.xlu1 %415 }
 0x234   :  { %v623_v34 = vpop.f32.mrf.mxu1 }
 0x235   :  { %v1079_v37 = vadd.f32 %v673_v33, %v623_v34  ;;  %v310_v33 = vadd.f32 %v309_v28, %v308_v15  ;;  %v438_v34 = vpop.permute.xlu1 %437 }
 0x236   :  { %v739_v38 = vpop.f32.mrf.mxu1 }
 0x237   :  { %v628_v39 = vsel %vm627_vm5, %v1079_v37, -inf  ;;  %v179_v38 = vadd.f32 %v178_v30, %v177_v25  ;;  %v426_v40 = vsel %vm403_vm2, %v310_v33, %v301_v32 }
 0x238   :  { %629 = vmax.xlane.f32.xlu0 %v628_v39  ;;  %v188_v39 = vadd.f32 %v187_v31, %v186_v26  ;;  %v451_v42 = vsel %vm172_vm4, %v426_v40, %v432_v16 }
 0x239   :  { %v444_v41 = vpop.permute.xlu1 %443  ;;  %v452_v43 = vsel %vm447_vm7, %v451_v42, %v438_v34  ;;  %v180_v46 = vrot.slane %v179_v38, 1 }
 0x23a   :  { %v453_v45 = vsel %vm449_vm6, %v452_v43, %v444_v41  ;;  %v189_v47 = vrot.slane %v188_v39, 1 }
 0x23b   :  { %v467_v48 = vadd.f32 %v463_v44, %v453_v45  ;;  %v181_v49 = vadd.f32 %v180_v46, %v179_v38 }
 0x23d   :  { %v670_v52 = vmul.f32 -1.442695, %v467_v48 }
 0x23f   :  { %769 = vpow2.f32 %v670_v52 }
 0x24c   :  { %v770_v0 = vpop.eup %769 }
 0x24d   :  { %v475_v3 = vadd.f32 1.0, %v770_v0 }
 0x24e   :  { %421 = vrot.lane.b32.xlu0 %v420_v50, %s833_s0  ;;  %v190_v50 = vadd.f32 %v189_v47, %v188_v39 }
 0x250   :  { %v404_v55 = vsel %vm403_vm2, %v190_v50, %v181_v49 }
 0x251   :  { %v446_v57 = vsel %vm172_vm4, %v404_v55, %v410_v10 }
 0x252   :  { %v448_v59 = vsel %vm447_vm7, %v446_v57, %v416_v23 }
 0x2c1   :  { %v630_v53 = vpop.xlane.xlu0 %629 }
 0x2c2   :  { %v631_v54 = vsub.f32 %v1079_v37, %v630_v53 }
 0x2c4   :  { %v632_v58 = vmul.f32 1.442695, %v631_v54 }
 0x2c5   :  { %v422_v60 = vpop.permute.xlu0 %421 }
 0x2c6   :  { %771 = vpow2.f32 %v632_v58  ;;  %v450_v61 = vsel %vm449_vm6, %v448_v59, %v422_v60 }
 0x2c7   :  { %v466_v62 = vadd.f32 %v459_v56, %v450_v61 }
 0x2c9   :  { %v669_v63 = vmul.f32 -1.442695, %v466_v62 }
 0x2cb   :  { %773 = vpow2.f32 %v669_v63 }
 0x2cc   :  { %775 = vrcp.f32 %v475_v3 }
 0x2d3   :  { %v772_v1 = vpop.eup %771 }
 0x2d4   :  { %v634_v37 = vsel %vm627_vm5, %v772_v1, 0.0 }
 0x2d5   :  { %635 = vadd.xlane.f32.xlu1 %v634_v37 }
 0x2d8   :  { %v774_v4 = vpop.eup %773 }
 0x2d9   :  { %v474_v5 = vadd.f32 1.0, %v774_v4  ;;  %v776_v6 = vpop.eup %775 }
 0x2db   :  { %777 = vrcp.f32 %v474_v5 }
 0x2e8   :  { %v778_v7 = vpop.eup %777 }
 0x2e9   :  { %v482_v8 = vcombine.low %v778_v7, %v776_v6 }
 0x2eb   :  { %671 = vst.sshfl [vmem:[#allocation4] sm:$0x33 pattern:$0x76325410] %v482_v8 }
 0x2ec   :  { %792 = shalt.err (!%p789_p4)
}
 0x2ed   :  { %659 = dma.vmem_to_hbm [thread:$0]  %s657_s24, 64, %s1131_s10, [#allocation5]  }
 0x2ee   :  { %s839_s28 = smov [#allocation2]  }
 0x2ef   :  { %s646_s29 = sshll.u32 %s839_s28, 4  ;;  %s647_s29 = int_to_ptr.vmem [resolvable:$true] %s646_s29 }
 0x2f0   :  { %s801_s7 = scalar_lea.vmem %s647_s29, 32  ;;  %p806_p6 = scmp.lt.s32.totalorder %s647_s29, %s647_s29 }
 0x2f1   :  { %p802_p5 = scmp.ne.s32.totalorder %s647_s29, %s801_s7  ;;  %p807_p7 = scmp.lt.s32.totalorder %s801_s7, %s801_s7 }
 0x2f3   :  { %p808_p8 = por %p807_p7, %p806_p6 }
 0x2f5   :  { %p809_p9 = pnand %p808_p8, %p802_p5 }
 0x35e   :  { %v636_v9 = vpop.xlane.xlu1 %635 }
 0x35f   :  { %779 = vrcp.f32 %v636_v9 }
 0x36c   :  { %v780_v10 = vpop.eup %779 }
 0x36d   :  { %v638_v2 = vmul.f32 %v780_v10, %v772_v1 }
 0x36f   :  { %639 = vst.msk [vmem:[#allocation2] sm:$0x3] %vm627_vm5, %v638_v2 }
 0x370   :  { %812 = shalt.err (!%p809_p9)
}
 0x371   :  { %649 = dma.vmem_to_hbm [thread:$0]  %s647_s29, 32, %s1130_s9, [#allocation3]  }
 0x372   :  { %821 = dma.done.wait [#allocation3], 32  }
 0x373   :  { %822 = vsyncadd [#allocation3], 4294967264 }
 0x374   :  { %823 = dma.done.wait [#allocation5], 64  }
 0x375   :  { %824 = vsyncadd [#allocation5], 4294967232 }
 0x376   :  { %666 = vsyncpa [#allocation3], 1 }
 0x377   :  { %667 = vsyncpa [#allocation5], 1 }

</bundles_post_ra>
